<compile_context>
chip_gen: v7x
topology: tpu7x:2x2x1
jax: 0.10.0
libtpu: 0.0.40
codegen_flags: <defaults>
</compile_context>

<pallas_src>
import jax
import jax.numpy as jnp
from jax.experimental import pallas as pl
from jax.experimental.pallas import tpu as pltpu

N_OUT = 2   # nn.Linear(hidden_dim, 2)
N_PAD = 8   # small zero-padded RHS width for the MXU; only N_OUT cols are stored


def _round_up(x, m):
    return ((x + m - 1) // m) * m


def _linear_kernel(x_ref, w_ref, b_ref, o_ref):
    # x_ref: (tm, H), w_ref: (H, N_PAD), b_ref: (1, N_PAD), o_ref: (tm, N_OUT)
    acc = jnp.dot(x_ref[...], w_ref[...], preferred_element_type=jnp.float32)
    acc = acc + b_ref[...]
    # Only the N_OUT real columns ever hit HBM.
    o_ref[...] = acc[:, :N_OUT].astype(o_ref.dtype)


def prepare_disambiguation_params(weight, bias, param_dtype=None):
    """weight: (N_OUT, H), bias: (N_OUT,) -> (w_t, b_p) padded to N_PAD cols.

    Call once at parameter-setup time and reuse across calls.  Pass
    param_dtype=jnp.bfloat16 (and feed bf16 activations) for ~2x less HBM read
    traffic; accumulation stays f32 in-kernel.
    """
    H = weight.shape[1]
    wdt = param_dtype if param_dtype is not None else weight.dtype
    w_t = jnp.zeros((H, N_PAD), dtype=wdt).at[:, :N_OUT].set(weight.T.astype(wdt))
    b_p = jnp.zeros((1, N_PAD), dtype=jnp.float32).at[0, :N_OUT].set(
        bias.astype(jnp.float32))
    return w_t, b_p


def _chip_config():
    """Returns (x_double_buffer_budget_bytes, num_tensorcores, vmem_limit_cap)."""
    kind = ""
    try:
        kind = jax.devices()[0].device_kind.lower()
    except Exception:
        pass
    if "7" in kind:                          # v7x: 64 MiB VMEM / TC, 2 TCs
        return 24 << 20, 2, 48 << 20
    if "v6" in kind or "trillium" in kind:   # v6e: 128 MiB VMEM, 1 TC
        return 32 << 20, 1, 96 << 20
    if "v5 lite" in kind or "v5e" in kind:   # v5e: 128 MiB VMEM, 1 TC, ~820 GB/s HBM
        return 12 << 20, 1, 64 << 20
    return 12 << 20, 2, 40 << 20             # unknown: conservative, assume 2 TCs


def _choose_tm(M, H, itemsize, budget_bytes, num_cores):
    # Small problems: one full-dim tile (legal regardless of M % 8).
    if M <= 16:
        return M
    max_tm = max(8, (budget_bytes // (2 * H * itemsize)) // 8 * 8)
    tm = min(512, max_tm, _round_up(M, 8))
    if num_cores > 1:
        # >= 2 row blocks per TensorCore so each core's pipeline overlaps the
        # next block's HBM read with compute (1 step/core = bare prologue).
        per_step = max(8, _round_up(pl.cdiv(M, 2 * num_cores), 8))
        tm = min(tm, per_step)
    return int(tm)


def disambiguation_head(x, w_t, b_p, *, tm=None, force_pallas=False):
    """x: (..., H); w_t/b_p from prepare_disambiguation_params. Returns (..., N_OUT) f32."""
    orig_shape = x.shape
    H = orig_shape[-1]
    x2d = x.reshape(-1, H)
    M = x2d.shape[0]
    n_pad = w_t.shape[1]

    # Tiny problems: XLA's fused matmul beats a pallas_call launch + 1-step grid.
    if not force_pallas and M * H < 65536:
        out = jnp.dot(x2d, w_t[:, :N_OUT],
                      preferred_element_type=jnp.float32) + b_p[:, :N_OUT]
        return out.reshape(*orig_shape[:-1], N_OUT)

    # Match activation dtype to the prepared weight dtype; allow_input_fusion
    # below lets XLA fuse this cast (and the reshape) into the kernel's HBM
    # read instead of materializing a converted copy of x.
    if x2d.dtype != w_t.dtype:
        x2d = x2d.astype(w_t.dtype)

    budget, num_cores, vmem_cap = _chip_config()
    if tm is None:
        tm = _choose_tm(M, H, x2d.dtype.itemsize, budget, num_cores)

    # Scoped-VMEM limit with lane/sublane padding accounted for:
    #   x block   (tm, H)  -> (tm, round_up(H,128)) per buffer, double-buffered
    #   out block (tm, 2)  -> (tm, 128) f32, double-buffered
    #   W block   (H, 8)   -> (round_up(H,8), 128), single-buffered
    #   b block   (1, 8)   -> (8, 128) f32
    h_lanes = _round_up(H, 128)
    in_buf = 2 * tm * h_lanes * x2d.dtype.itemsize
    out_buf = 2 * tm * 128 * 4
    w_buf = _round_up(H, 8) * 128 * w_t.dtype.itemsize
    b_buf = 8 * 128 * 4
    vmem_limit = int(min(vmem_cap,
                         max(16 << 20,
                             in_buf + out_buf + w_buf + b_buf + (2 << 20))))

    cost = pl.CostEstimate(
        flops=2 * M * H * N_OUT,
        transcendentals=0,
        bytes_accessed=(M * H * x2d.dtype.itemsize
                        + M * N_OUT * 4
                        + H * n_pad * w_t.dtype.itemsize
                        + n_pad * 4),
    )

    grid = (pl.cdiv(M, tm),)
    out = pl.pallas_call(
        _linear_kernel,
        out_shape=jax.ShapeDtypeStruct((M, N_OUT), jnp.float32),
        grid_spec=pltpu.PrefetchScalarGridSpec(
            num_scalar_prefetch=0,
            grid=grid,
            in_specs=[
                pl.BlockSpec((tm, H), lambda i: (i, 0)),
                # Constant index_map -> fetched once; single-buffer to save VMEM.
                pl.BlockSpec((H, n_pad), lambda i: (0, 0),
                             pipeline_mode=pl.Buffered(1)),
                pl.BlockSpec((1, n_pad), lambda i: (0, 0),
                             pipeline_mode=pl.Buffered(1)),
            ],
            out_specs=pl.BlockSpec((tm, N_OUT), lambda i: (i, 0)),
        ),
        compiler_params=pltpu.CompilerParams(
            dimension_semantics=("parallel",),
            vmem_limit_bytes=vmem_limit,
            # Let producers of x (reshape / dtype cast) fuse into the kernel's
            # own input read so bf16 activations are a true 2x read saving.
            allow_input_fusion=[True, False, False],
        ),
        cost_estimate=cost,
    )(x2d, w_t, b_p)

    # TODO(synk): if xprof ever shows a store-bound epilogue, switch to a
    # lane-dense (2, M) output via an in-kernel transpose; output bytes are
    # only M*8 today so this is skipped.
    return out.reshape(*orig_shape[:-1], N_OUT)


if __name__ == "__main__":
    key = jax.random.PRNGKey(0)

    # --- Small shape implied by the module (batch=2, seq=8, hidden=32) ------
    B, S, H = 2, 8, 32
    kx, kw, kb = jax.random.split(key, 3)
    x = jax.random.normal(kx, (B, S, H), dtype=jnp.float32)

    bound = 1.0 / (H ** 0.5)   # PyTorch nn.Linear default init range
    weight = jax.random.uniform(kw, (N_OUT, H), minval=-bound, maxval=bound,
                                dtype=jnp.float32)
    bias = jax.random.uniform(kb, (N_OUT,), minval=-bound, maxval=bound,
                              dtype=jnp.float32)

    # Parameter prep hoisted out of the per-call path.
    w_t, b_p = prepare_disambiguation_params(weight, bias)

    out = disambiguation_head(x, w_t, b_p, force_pallas=True)  # exercise the kernel
    out = jax.block_until_ready(out)
    ref = x @ weight.T + bias
    assert out.shape == (B, S, N_OUT), out.shape
    assert jnp.allclose(out, ref, atol=1e-5, rtol=1e-5), "small-shape mismatch"

    # --- Slightly larger shape: exercises the tiled multi-step grid path ----
    B2, S2, H2 = 6, 100, 128
    kx2, kw2, kb2 = jax.random.split(jax.random.PRNGKey(1), 3)
    x2 = jax.random.normal(kx2, (B2, S2, H2), dtype=jnp.float32)
    bound2 = 1.0 / (H2 ** 0.5)
    weight2 = jax.random.uniform(kw2, (N_OUT, H2), minval=-bound2, maxval=bound2,
                                 dtype=jnp.float32)
    bias2 = jax.random.uniform(kb2, (N_OUT,), minval=-bound2, maxval=bound2,
                               dtype=jnp.float32)
    w_t2, b_p2 = prepare_disambiguation_params(weight2, bias2)

    out2 = jax.block_until_ready(disambiguation_head(x2, w_t2, b_p2))
    ref2 = x2 @ weight2.T + bias2
    assert out2.shape == (B2, S2, N_OUT), out2.shape
    assert jnp.allclose(out2, ref2, atol=5e-3, rtol=5e-3), "tiled-shape mismatch"

    print("KERNEL_OK")
</pallas_src>

<mosaic_0001>
module attributes {stable_mosaic.version = 11 : i64} {
  func.func @_linear_kernel(%arg0: i32, %arg1: memref<16x32xf32, #tpu.memory_space<vmem>>, %arg2: memref<32x8xf32, #tpu.memory_space<vmem>>, %arg3: memref<1x8xf32, #tpu.memory_space<vmem>>, %arg4: memref<16x2xf32, #tpu.memory_space<vmem>>) attributes {dimension_semantics = [#tpu.dimension_semantics<parallel>], iteration_bounds = array<i64: 1>, scalar_prefetch = 0 : i64, scratch_operands = 0 : i64, tpu.core_type = #tpu.core_type<tc>, window_params = [{transform_indices = @transform_0, window_bounds = array<i64: 16, 32>}, {pipeline_mode = #tpu.pipeline_mode<synchronous>, transform_indices = @transform_1, window_bounds = array<i64: 32, 8>}, {pipeline_mode = #tpu.pipeline_mode<synchronous>, transform_indices = @transform_2, window_bounds = array<i64: 1, 8>}, {transform_indices = @transform_3, window_bounds = array<i64: 16, 2>}]} {
    %c0 = arith.constant 0 : index
    %c0_0 = arith.constant 0 : index
    %0 = vector.load %arg1[%c0, %c0_0] : memref<16x32xf32, #tpu.memory_space<vmem>>, vector<16x32xf32>
    %c0_1 = arith.constant 0 : index
    %c0_2 = arith.constant 0 : index
    %1 = vector.load %arg2[%c0_1, %c0_2] : memref<32x8xf32, #tpu.memory_space<vmem>>, vector<32x8xf32>
    %cst = arith.constant dense<0.000000e+00> : vector<16x8xf32>
    %2 = tpu.matmul %0, %1, %cst {dimension_numbers = #tpu.dot_dimension_numbers<[1], [0], [0], [1], [0, 0, 1, 1], [], []>} : vector<16x32xf32>, vector<32x8xf32>, vector<16x8xf32> -> vector<16x8xf32>
    %c0_3 = arith.constant 0 : index
    %c0_4 = arith.constant 0 : index
    %3 = vector.load %arg3[%c0_3, %c0_4] : memref<1x8xf32, #tpu.memory_space<vmem>>, vector<1x8xf32>
    %4 = vector.broadcast %3 : vector<1x8xf32> to vector<16x8xf32>
    %5 = arith.addf %2, %4 : vector<16x8xf32>
    %6 = vector.extract_strided_slice %5 {offsets = [0, 0], sizes = [16, 2], strides = [1, 1]} : vector<16x8xf32> to vector<16x2xf32>
    %c0_5 = arith.constant 0 : index
    %c0_6 = arith.constant 0 : index
    %7 = vector.load %arg4[%c0_5, %c0_6] : memref<16x2xf32, #tpu.memory_space<vmem>>, vector<16x2xf32>
    tpu.vector_store %arg4[%c0_5, %c0_6], %6 {strides = array<i32>} : memref<16x2xf32, #tpu.memory_space<vmem>>, vector<16x2xf32>,
    return
  }
  func.func @transform_0(%arg0: i32) -> (i32, i32) {
    %c0_i32 = arith.constant 0 : i32
    %c0_i32_0 = arith.constant 0 : i32
    return %arg0, %c0_i32 : i32, i32
  }
  func.func @transform_1(%arg0: i32) -> (i32, i32) {
    %c0_i32 = arith.constant 0 : i32
    %c0_i32_0 = arith.constant 0 : i32
    %c0_i32_1 = arith.constant 0 : i32
    return %c0_i32, %c0_i32_0 : i32, i32
  }
  func.func @transform_2(%arg0: i32) -> (i32, i32) {
    %c0_i32 = arith.constant 0 : i32
    %c0_i32_0 = arith.constant 0 : i32
    %c0_i32_1 = arith.constant 0 : i32
    return %c0_i32, %c0_i32_0 : i32, i32
  }
  func.func @transform_3(%arg0: i32) -> (i32, i32) {
    %c0_i32 = arith.constant 0 : i32
    %c0_i32_0 = arith.constant 0 : i32
    return %arg0, %c0_i32 : i32, i32
  }
}

</mosaic_0001>

<bundles_post_ra>
// kernel: tpu_custom_call.1
= control target key start
LH: loop header
LB: loop body
LE: loop exit
PB: predicated region body
PF: predicated region fallthrough
CT: control target
= control target key end

     0   :  { %vm27_vm0 = vcmask 261120   ;;  %vm109_vm1 = vcmask 15360   ;;  %s191_s1 = inlined_call_operand.vmem [shape: f32[32,8], index: 1, kind: input, shape index: {}]   ;;  %s192_s0 = inlined_call_operand.vmem [shape: f32[16,32], index: 0, kind: input, shape index: {}]   ;;  %s193_s2 = inlined_call_operand.vmem [shape: f32[1,8], index: 2, kind: input, shape index: {}]   ;;  %s194_s3 = inlined_call_operand.vmem [shape: f32[16,2], index: 3, kind: output, shape index: {}]  }
   0x1   :  { %v16_v0 = vld [vmem:[%s191_s1] sm:$0xff]  ;;  %v17_v1 = vld [vmem:[%s191_s1 + $0x8] sm:$0xff]  ;;  %v18_v2 = vld [vmem:[%s191_s1 + $0x10] sm:$0xff] }
   0x2   :  { %v136_v3 = vpack.c.bf16 %v17_v1, %v16_v0  ;;  %v19_v4 = vld [vmem:[%s191_s1 + $0x18] sm:$0xff]  ;;  %v14_v5 = vld [vmem:[%s192_s0] sm:$0xff]  ;;  %v15_v7 = vld [vmem:[%s192_s0 + $0x8] sm:$0xff] }
   0x3   :  { %v140_v6 = vpack.c.bf16 %v19_v4, %v18_v2  ;;  %133 = vmatprep.mubr.msk.f32.mxu0 %vm27_vm0, %v14_v5  ;;  %v116_v8 = vld [vmem:[%s193_s2] ss:$0 sm:$0xff] }
   0x4   :  { %137 = vmatprep.subr.bf16.mxu0 %v136_v3 }
   0x5   :  { %139 = vmatpush3.bf16.msra.mxu0 %v136_v3 }
   0x6   :  { %141 = vmatprep.subr.bf16.mxu0 %v140_v6 }
   0x9   :  { %143 = vmatpush3.bf16.msra.mxu0 %v140_v6 }
   0xc   :  { %134 = vmatmul.mubr.msk.f32.vlgmr.msra.gmra.mrb[0].mxu0 %vm27_vm0, %v15_v7 }
  0xdf   :  { %v135_v9 = vpop.f32.mrb[0].mxu0 }
  0xe0   :  { %v106_v10 = vadd.f32 %v135_v9, %v116_v8  ;;  %v100_v11 = vpop.f32.mrb[1].mxu0 }
  0xe1   :  { %v101_v12 = vadd.f32 %v116_v8, %v100_v11 }
  0xe2   :  { %111 = vst.msk [vmem:[%s194_s3 + $0x8] sm:$0xff] %vm109_vm1, %v106_v10 }
  0xe3   :  { %110 = vst.msk [vmem:[%s194_s3] sm:$0xff] %vm109_vm1, %v101_v12 }

</bundles_post_ra>
